<compile_context>
chip_gen: v7x
topology: tpu7x:2x2x1
jax: 0.10.0
libtpu: 0.0.40
codegen_flags: <defaults>
</compile_context>

<pallas_src>
import functools
import math

import jax
import jax.numpy as jnp
from jax.experimental import pallas as pl
from jax.experimental.pallas import tpu as pltpu


def _round_up(n, m):
    return ((n + m - 1) // m) * m


def _vmem_limit(block_bytes):
    # Double-buffered pipelined blocks + headroom for Mosaic internal scratch.
    # Clamp to [32 MiB, 56 MiB]: >= typical scoped defaults, < v7x's 64 MiB physical VMEM.
    need = 2 * int(block_bytes) + (4 << 20)
    return int(max(32 << 20, min(need, 56 << 20)))


def _tiles(bpad, cpad):
    # >=2 batch tiles so a megacore (v7x) can shard the "parallel" batch axis;
    # lane-dense 256/512-wide column tiles for unmasked stores and good MXU N.
    tm = 128 if bpad >= 256 else 64
    tn = 512 if cpad % 512 == 0 else 256
    return tm, tn


# ---------------------------------------------------------------------------
# Kernel 1: row-wise L2 normalize (F.normalize, eps=1e-12) + cast to bf16.
# Used only for W now (x normalization is fused into the matmul kernels).
# ---------------------------------------------------------------------------
def _rownorm_kernel(x_ref, out_ref):
    x = x_ref[...].astype(jnp.float32)
    ss = jnp.sum(x * x, axis=-1, keepdims=True)
    # x / max(||x||, eps)  ==  x * rsqrt(max(ss, eps**2));  rsqrt lands on the EUP slot.
    inv = jax.lax.rsqrt(jnp.maximum(ss, jnp.float32(1e-24)))
    out_ref[...] = (x * inv).astype(out_ref.dtype)


def rownorm_bf16(x, rows_pad):
    """Zero-pad rows to `rows_pad`, L2-normalize every row, return bf16."""
    r, f = x.shape
    if rows_pad != r:
        x = jnp.pad(x, ((0, rows_pad - r), (0, 0)))
    # Row tile capped at 256 so the f32-in + bf16-out double buffers stay small on v7x.
    tr = next(c for c in (256, 128, 64, 32, 16, 8) if rows_pad % c == 0)
    blk_bytes = tr * f * (4 + 2)
    return pl.pallas_call(
        _rownorm_kernel,
        out_shape=jax.ShapeDtypeStruct((rows_pad, f), jnp.bfloat16),
        grid=(rows_pad // tr,),
        in_specs=[pl.BlockSpec((tr, f), lambda i: (i, 0))],
        out_specs=pl.BlockSpec((tr, f), lambda i: (i, 0)),
        compiler_params=pltpu.CompilerParams(
            dimension_semantics=("parallel",),
            vmem_limit_bytes=_vmem_limit(blk_bytes),
        ),
    )(x)


# ---------------------------------------------------------------------------
# Kernel 2a: tiled cosine-logits matmul with fused x normalization (label=None).
# ---------------------------------------------------------------------------
def _matmul_kernel(x_ref, wn_ref, logits_ref, xn_scr):
    @pl.when(pl.program_id(1) == 0)
    def _():
        xf = x_ref[...].astype(jnp.float32)
        ss = jnp.sum(xf * xf, axis=-1, keepdims=True)
        xn_scr[...] = (xf * jax.lax.rsqrt(jnp.maximum(ss, jnp.float32(1e-24)))
                       ).astype(xn_scr.dtype)

    logits_ref[...] = jax.lax.dot_general(
        xn_scr[...], wn_ref[...], (((1,), (1,)), ((), ())),
        preferred_element_type=jnp.float32,
    ).astype(logits_ref.dtype)


def cosine_logits_plain(x_pad, wn):
    bpad, f = x_pad.shape
    cpad, _ = wn.shape
    tm, tn = _tiles(bpad, cpad)
    grid = (bpad // tm, cpad // tn)
    blk_bytes = tm * f * 4 + tn * f * 2 + tm * tn * 2 + tm * f * 2
    return pl.pallas_call(
        _matmul_kernel,
        out_shape=jax.ShapeDtypeStruct((bpad, cpad), jnp.bfloat16),
        grid=grid,
        in_specs=[
            pl.BlockSpec((tm, f), lambda i, j: (i, 0)),   # raw f32 x (resident across j)
            pl.BlockSpec((tn, f), lambda i, j: (j, 0)),   # normalized bf16 W
        ],
        out_specs=pl.BlockSpec((tm, tn), lambda i, j: (i, j)),
        scratch_shapes=[pltpu.VMEM((tm, f), jnp.bfloat16)],
        compiler_params=pltpu.CompilerParams(
            dimension_semantics=("parallel", "arbitrary"),
            vmem_limit_bytes=_vmem_limit(blk_bytes),
        ),
        cost_estimate=pl.CostEstimate(
            flops=2 * bpad * cpad * f,
            transcendentals=0,
            bytes_accessed=bpad * f * 4 + (bpad // tm) * cpad * f * 2 + bpad * cpad * 2,
        ),
    )(x_pad, wn)


# ---------------------------------------------------------------------------
# Kernel 2b: matmul + fused AdaCos B_avg / label-logit partials (training path).
#   bsum / labsum are per-row accumulators resident across the column-tile axis j.
# ---------------------------------------------------------------------------
def _matmul_bavg_kernel(labels_ref, s_ref, x_ref, wn_ref,
                        logits_ref, bsum_ref, labsum_ref, xn_scr, *, tn):
    j = pl.program_id(1)

    @pl.when(j == 0)
    def _():
        xf = x_ref[...].astype(jnp.float32)
        ss = jnp.sum(xf * xf, axis=-1, keepdims=True)
        xn_scr[...] = (xf * jax.lax.rsqrt(jnp.maximum(ss, jnp.float32(1e-24)))
                       ).astype(xn_scr.dtype)
        bsum_ref[...] = jnp.zeros_like(bsum_ref)
        labsum_ref[...] = jnp.zeros_like(labsum_ref)

    logits = jax.lax.dot_general(
        xn_scr[...], wn_ref[...], (((1,), (1,)), ((), ())),
        preferred_element_type=jnp.float32,
    )
    logits_ref[...] = logits.astype(logits_ref.dtype)

    tm = logits.shape[0]
    col_ids = j * tn + jax.lax.broadcasted_iota(jnp.int32, (tm, tn), 1)
    is_label = col_ids == labels_ref[...]            # (tm, 1) broadcast over columns

    # Per-row label logit in f32 (replaces an XLA take_along_axis over the full logits).
    labsum_ref[...] += jnp.sum(jnp.where(is_label, logits, 0.0), axis=-1, keepdims=True)

    # AdaCos B_avg partial.  exp evaluated in bf16 (fast EUP path on v6e/v7x, widened on
    # v5e); label column excluded here, padded columns (logit==0 -> exp==1) and padded
    # rows are corrected exactly in the scalar glue.
    e = jnp.exp((s_ref[0, 0] * logits).astype(jnp.bfloat16)).astype(jnp.float32)
    bsum_ref[...] += jnp.sum(jnp.where(is_label, 0.0, e), axis=-1, keepdims=True)


def cosine_logits_fused(x_pad, wn, labels_pad, s_old):
    bpad, f = x_pad.shape
    cpad, _ = wn.shape
    tm, tn = _tiles(bpad, cpad)
    grid = (bpad // tm, cpad // tn)
    kern = functools.partial(_matmul_bavg_kernel, tn=tn)
    blk_bytes = tm * f * 4 + tn * f * 2 + tm * tn * 2 + tm * f * 2 + 2 * tm * 4
    logits, bsum, labsum = pl.pallas_call(
        kern,
        out_shape=(
            jax.ShapeDtypeStruct((bpad, cpad), jnp.bfloat16),
            jax.ShapeDtypeStruct((bpad, 1), jnp.float32),
            jax.ShapeDtypeStruct((bpad, 1), jnp.float32),
        ),
        grid=grid,
        in_specs=[
            pl.BlockSpec((tm, 1), lambda i, j: (i, 0)),            # labels
            pl.BlockSpec(memory_space=pltpu.MemorySpace.SMEM),     # s_old scalar
            pl.BlockSpec((tm, f), lambda i, j: (i, 0)),            # raw f32 x
            pl.BlockSpec((tn, f), lambda i, j: (j, 0)),            # normalized bf16 W
        ],
        out_specs=(
            pl.BlockSpec((tm, tn), lambda i, j: (i, j)),           # bf16 logits
            pl.BlockSpec((tm, 1), lambda i, j: (i, 0)),            # B_avg row partials
            pl.BlockSpec((tm, 1), lambda i, j: (i, 0)),            # label logits (f32)
        ),
        scratch_shapes=[pltpu.VMEM((tm, f), jnp.bfloat16)],
        compiler_params=pltpu.CompilerParams(
            dimension_semantics=("parallel", "arbitrary"),  # accumulators over j
            vmem_limit_bytes=_vmem_limit(blk_bytes),
        ),
        cost_estimate=pl.CostEstimate(
            flops=2 * bpad * cpad * f,
            transcendentals=bpad * cpad,
            bytes_accessed=(bpad * f * 4 + (bpad // tm) * cpad * f * 2
                            + bpad * cpad * 2 + bpad * 8),
        ),
    )(labels_pad, s_old, x_pad, wn)
    return logits, bsum, labsum


# ---------------------------------------------------------------------------
# AdaCos module (forward semantics of the PyTorch reference).
# ---------------------------------------------------------------------------
class AdaCos:
    def __init__(self, num_features, num_classes, m=0.5, key=None):
        self.num_features = num_features
        self.n_classes = num_classes
        self.s = jnp.float32(math.sqrt(2.0) * math.log(num_classes - 1))
        self.m = m
        # nn.init.xavier_uniform_ on W (num_classes, num_features)
        bound = math.sqrt(6.0 / (num_features + num_classes))
        self.W = jax.random.uniform(
            key, (num_classes, num_features),
            minval=-bound, maxval=bound, dtype=jnp.float32,
        )

    def __call__(self, x, label=None):
        B, _ = x.shape
        C = self.n_classes
        bpad = max(128, _round_up(B, 128))   # sublane-dense, >=2 batch tiles
        cpad = max(256, _round_up(C, 256))   # lane-dense 256/512-wide column tiles

        x_pad = jnp.pad(x.astype(jnp.float32), ((0, bpad - B), (0, 0)))
        # W normalized once per call (bf16), reused by every batch tile.
        wn = rownorm_bf16(self.W, cpad)

        if label is None:
            logits_pad = cosine_logits_plain(x_pad, wn)
            return logits_pad[:B, :C].astype(jnp.float32)

        label = label.astype(jnp.int32)
        labels_pad = jnp.full((bpad, 1), -1, jnp.int32).at[:B, 0].set(label)
        s_in = jnp.reshape(jnp.asarray(self.s, dtype=jnp.float32), (1, 1))

        logits_pad, bsum, labsum = cosine_logits_fused(x_pad, wn, labels_pad, s_in)
        logits = logits_pad[:B, :C].astype(jnp.float32)

        # ---- scalar glue (mirrors the torch.no_grad block) ----
        # Padded columns carry logit==0 -> exp(0)==1 exactly; subtract their contribution.
        b_avg = (jnp.sum(bsum[:B, 0]) - jnp.float32(B * (cpad - C))) / jnp.float32(B)
        lab_logit = labsum[:B, 0]
        theta_lab = jnp.arccos(jnp.clip(lab_logit, -1.0 + 1e-7, 1.0 - 1e-7))
        # TODO(synk): torch.median (lower-middle element) has no direct Pallas reduction;
        # computed via a sort of B scalars in JAX glue.
        theta_med = jnp.sort(theta_lab)[(B - 1) // 2]
        s_new = jax.lax.stop_gradient(
            jnp.log(b_avg) / jnp.cos(jnp.minimum(jnp.float32(math.pi / 4), theta_med)))
        self.s = s_new  # matches PyTorch's in-place self.s update under no_grad
        # Trivial scalar broadcast left to XLA (bf16 logits read, f32 output).
        return s_new * logits


if __name__ == "__main__":
    key = jax.random.PRNGKey(0)
    k_w, k_x, k_lab = jax.random.split(key, 3)

    batch = 8
    num_features = 32
    num_classes = 16

    module = AdaCos(num_features, num_classes, key=k_w)
    x = jax.random.normal(k_x, (batch, num_features), dtype=jnp.float32)
    labels = jax.random.randint(k_lab, (batch,), 0, num_classes, dtype=jnp.int32)

    s0 = float(module.s)

    # label=None path: plain cosine logits
    logits = module(x)
    jax.block_until_ready(logits)

    # label path: adaptive scale update + scaled output
    out = module(x, labels)
    jax.block_until_ready(out)
    jax.block_until_ready(module.s)

    # ---- sanity check against a pure-JAX reference (same bf16 operand / output dtypes) ----
    def _norm_bf16(a):
        ss = jnp.sum(a * a, axis=-1, keepdims=True)
        return (a * jax.lax.rsqrt(jnp.maximum(ss, 1e-24))).astype(jnp.bfloat16)

    xr = _norm_bf16(x).astype(jnp.float32)
    wr = _norm_bf16(module.W).astype(jnp.float32)
    logits_f32_ref = jnp.matmul(xr, wr.T, precision=jax.lax.Precision.HIGHEST)
    logits_ref = logits_f32_ref.astype(jnp.bfloat16).astype(jnp.float32)
    assert float(jnp.max(jnp.abs(logits - logits_ref))) < 2e-2

    one_hot = jax.nn.one_hot(labels, num_classes)
    b_avg_ref = jnp.sum(jnp.where(one_hot < 1, jnp.exp(s0 * logits_f32_ref), 0.0)) / batch
    lab_ref = jnp.take_along_axis(logits_f32_ref, labels.reshape(batch, 1), axis=1)[:, 0]
    theta_lab_ref = jnp.arccos(jnp.clip(lab_ref, -1.0 + 1e-7, 1.0 - 1e-7))
    theta_med_ref = jnp.sort(theta_lab_ref)[(batch - 1) // 2]
    s_new_ref = jnp.log(b_avg_ref) / jnp.cos(jnp.minimum(jnp.float32(math.pi / 4),
                                                         theta_med_ref))
    out_ref = s_new_ref * logits_ref

    assert float(jnp.abs(module.s - s_new_ref)) < 5e-2
    assert float(jnp.max(jnp.abs(out - out_ref))) < 1e-1
    assert bool(jnp.all(jnp.isfinite(out)))

    print("KERNEL_OK")
</pallas_src>

<mosaic_0001>
module attributes {stable_mosaic.version = 11 : i64} {
  func.func @_rownorm_kernel(%arg0: i32, %arg1: memref<256x32xf32, #tpu.memory_space<vmem>>, %arg2: memref<256x32xbf16, #tpu.memory_space<vmem>>) attributes {dimension_semantics = [#tpu.dimension_semantics<parallel>], iteration_bounds = array<i64: 1>, scalar_prefetch = 0 : i64, scratch_operands = 0 : i64, tpu.core_type = #tpu.core_type<tc>, window_params = [{transform_indices = @transform_0, window_bounds = array<i64: 256, 32>}, {transform_indices = @transform_1, window_bounds = array<i64: 256, 32>}]} {
    %c0 = arith.constant 0 : index
    %c0_0 = arith.constant 0 : index
    %0 = vector.load %arg1[%c0, %c0_0] : memref<256x32xf32, #tpu.memory_space<vmem>>, vector<256x32xf32>
    %1 = arith.mulf %0, %0 : vector<256x32xf32>
    %cst = arith.constant dense<0.000000e+00> : vector<256xf32>
    %2 = vector.multi_reduction <add>, %1, %cst [1] : vector<256x32xf32> to vector<256xf32>
    %3 = vector.shape_cast %2 : vector<256xf32> to vector<256x1xf32>
    %cst_1 = arith.constant 1.000000e-24 : f32
    %4 = vector.broadcast %cst_1 : f32 to vector<256x1xf32>
    %5 = arith.maximumf %3, %4 : vector<256x1xf32>
    %6 = math.rsqrt %5 : vector<256x1xf32>
    %7 = vector.broadcast %6 : vector<256x1xf32> to vector<256x32xf32>
    %8 = arith.mulf %0, %7 : vector<256x32xf32>
    %9 = arith.truncf %8 : vector<256x32xf32> to vector<256x32xbf16>
    %c0_2 = arith.constant 0 : index
    %c0_3 = arith.constant 0 : index
    %10 = vector.load %arg2[%c0_2, %c0_3] : memref<256x32xbf16, #tpu.memory_space<vmem>>, vector<256x32xbf16>
    tpu.vector_store %arg2[%c0_2, %c0_3], %9 {strides = array<i32>} : memref<256x32xbf16, #tpu.memory_space<vmem>>, vector<256x32xbf16>,
    return
  }
  func.func @transform_0(%arg0: i32) -> (i32, i32) {
    %c0_i32 = arith.constant 0 : i32
    %c0_i32_0 = arith.constant 0 : i32
    return %arg0, %c0_i32 : i32, i32
  }
  func.func @transform_1(%arg0: i32) -> (i32, i32) {
    %c0_i32 = arith.constant 0 : i32
    %c0_i32_0 = arith.constant 0 : i32
    return %arg0, %c0_i32 : i32, i32
  }
}

</mosaic_0001>

<bundles_post_ra>
// kernel: tpu_custom_call.1
= control target key start
LH: loop header
LB: loop body
LE: loop exit
PB: predicated region body
PF: predicated region fallthrough
CT: control target
= control target key end

     0   :  { %vm72_vm0 = vcmask 261120   ;;  %vm393_vm1 = vcmask 257024   ;;  %s984_s0 = inlined_call_operand.vmem [shape: f32[256,32], index: 0, kind: input, shape index: {}]   ;;  %s985_s1 = inlined_call_operand.vmem [shape: bf16[256,32], index: 1, kind: output, shape index: {}]  }
   0x1   :  { %v571_v0 = vld [vmem:[%s984_s0 + $0x10] sm:$0xff]  ;;  %v576_v1 = vld [vmem:[%s984_s0] sm:$0xff]  ;;  %v581_v2 = vld [vmem:[%s984_s0 + $0x18] sm:$0xff] }
   0x2   :  { %v42_v3 = vmul.f32 %v571_v0, %v571_v0  ;;  %v40_v4 = vmul.f32 %v576_v1, %v576_v1  ;;  %v43_v5 = vmul.f32 %v581_v2, %v581_v2  ;;  %v592_v6 = vld [vmem:[%s984_s0 + $0x8] sm:$0xff]  ;;  %v604_v9 = vld [vmem:[%s984_s0 + $0x20] sm:$0xff]  ;;  %v617_v16 = vld [vmem:[%s984_s0 + $0x38] sm:$0xff] }
   0x3   :  { %v41_v7 = vmul.f32 %v592_v6, %v592_v6  ;;  %v599_v8 = vld [vmem:[%s984_s0 + $0x28] sm:$0xff]  ;;  %v44_v15 = vmul.f32 %v604_v9, %v604_v9  ;;  %v622_v17 = vld [vmem:[%s984_s0 + $0x30] sm:$0xff]  ;;  %v47_v20 = vmul.f32 %v617_v16, %v617_v16  ;;  %v638_v23 = vld [vmem:[%s984_s0 + $0x40] sm:$0xff] }
   0x4   :  { %v79_v10 = vsel %vm72_vm0, %v42_v3, 0.0  ;;  %v73_v11 = vsel %vm72_vm0, %v40_v4, 0.0  ;;  %v82_v12 = vsel %vm72_vm0, %v43_v5, 0.0  ;;  %v45_v14 = vmul.f32 %v599_v8, %v599_v8  ;;  %v633_v22 = vld [vmem:[%s984_s0 + $0x48] sm:$0xff]  ;;  %v649_v28 = vld [vmem:[%s984_s0 + $0x58] sm:$0xff]  ;;  %v654_v29 = vld [vmem:[%s984_s0 + $0x50] sm:$0xff] }
   0x5   :  { %80 = vadd.xlane.f32.xlu1 %v79_v10  ;;  %74 = vadd.xlane.f32.xlu0 %v73_v11  ;;  %v76_v13 = vsel %vm72_vm0, %v41_v7, 0.0  ;;  %v85_v19 = vsel %vm72_vm0, %v44_v15, 0.0  ;;  %v46_v21 = vmul.f32 %v622_v17, %v622_v17  ;;  %v94_v24 = vsel %vm72_vm0, %v47_v20, 0.0  ;;  %v665_v34 = vld [vmem:[%s984_s0 + $0x68] sm:$0xff]  ;;  %v670_v35 = vld [vmem:[%s984_s0 + $0x60] sm:$0xff]  ;;  %v681_v40 = vld [vmem:[%s984_s0 + $0x78] sm:$0xff] }
   0x6   :  { %v88_v18 = vsel %vm72_vm0, %v45_v14, 0.0  ;;  %v49_v26 = vmul.f32 %v633_v22, %v633_v22  ;;  %v48_v27 = vmul.f32 %v638_v23, %v638_v23  ;;  %v51_v32 = vmul.f32 %v649_v28, %v649_v28  ;;  %v686_v41 = vld [vmem:[%s984_s0 + $0x70] sm:$0xff]  ;;  %v697_v46 = vld [vmem:[%s984_s0 + $0x88] sm:$0xff]  ;;  %v702_v47 = vld [vmem:[%s984_s0 + $0x80] sm:$0xff] }
   0x7   :  { %v91_v25 = vsel %vm72_vm0, %v46_v21, 0.0  ;;  %v50_v33 = vmul.f32 %v654_v29, %v654_v29  ;;  %v53_v38 = vmul.f32 %v665_v34, %v665_v34  ;;  %v52_v39 = vmul.f32 %v670_v35, %v670_v35  ;;  %v713_v52 = vld [vmem:[%s984_s0 + $0x98] sm:$0xff]  ;;  %v718_v53 = vld [vmem:[%s984_s0 + $0x90] sm:$0xff]  ;;  %v729_v58 = vld [vmem:[%s984_s0 + $0xa8] sm:$0xff] }
   0x8   :  { %v100_v30 = vsel %vm72_vm0, %v49_v26, 0.0  ;;  %v97_v31 = vsel %vm72_vm0, %v48_v27, 0.0  ;;  %v106_v36 = vsel %vm72_vm0, %v51_v32, 0.0  ;;  %v55_v44 = vmul.f32 %v681_v40, %v681_v40  ;;  %v734_v59 = vld [vmem:[%s984_s0 + $0xa0] sm:$0xff]  ;;  %v745_v3 = vld [vmem:[%s984_s0 + $0xb8] sm:$0xff]  ;;  %v750_v4 = vld [vmem:[%s984_s0 + $0xb0] sm:$0xff] }
   0x9   :  { %83 = vadd.xlane.f32.xlu1 %v82_v12  ;;  %77 = vadd.xlane.f32.xlu0 %v76_v13  ;;  %v103_v37 = vsel %vm72_vm0, %v50_v33, 0.0  ;;  %v112_v42 = vsel %vm72_vm0, %v53_v38, 0.0  ;;  %v109_v43 = vsel %vm72_vm0, %v52_v39, 0.0  ;;  %v54_v45 = vmul.f32 %v686_v41, %v686_v41  ;;  %v761_v12 = vld [vmem:[%s984_s0 + $0xc8] sm:$0xff]  ;;  %v766_v13 = vld [vmem:[%s984_s0 + $0xc0] sm:$0xff]  ;;  %v777_v20 = vld [vmem:[%s984_s0 + $0xd8] sm:$0xff] }
   0xa   :  { %v118_v48 = vsel %vm72_vm0, %v55_v44, 0.0  ;;  %v57_v50 = vmul.f32 %v697_v46, %v697_v46  ;;  %v56_v51 = vmul.f32 %v702_v47, %v702_v47  ;;  %v59_v56 = vmul.f32 %v713_v52, %v713_v52  ;;  %v782_v21 = vld [vmem:[%s984_s0 + $0xd0] sm:$0xff]  ;;  %v809_v38 = vld [vmem:[%s984_s0 + $0xf8] sm:$0xff] }
   0xb   :  { %v115_v49 = vsel %vm72_vm0, %v54_v45, 0.0  ;;  %v58_v57 = vmul.f32 %v718_v53, %v718_v53  ;;  %v61_v62 = vmul.f32 %v729_v58, %v729_v58  ;;  %v60_v63 = vmul.f32 %v734_v59, %v734_v59  ;;  %v814_v39 = vld [vmem:[%s984_s0 + $0xf0] sm:$0xff] }
   0xc   :  { %v124_v54 = vsel %vm72_vm0, %v57_v50, 0.0  ;;  %v121_v55 = vsel %vm72_vm0, %v56_v51, 0.0  ;;  %v130_v60 = vsel %vm72_vm0, %v59_v56, 0.0  ;;  %v63_v10 = vmul.f32 %v745_v3, %v745_v3 }
   0xd   :  { %89 = vadd.xlane.f32.xlu1 %v88_v18  ;;  %86 = vadd.xlane.f32.xlu0 %v85_v19  ;;  %v127_v61 = vsel %vm72_vm0, %v58_v57, 0.0  ;;  %v136_v5 = vsel %vm72_vm0, %v61_v62, 0.0  ;;  %v133_v7 = vsel %vm72_vm0, %v60_v63, 0.0  ;;  %v62_v11 = vmul.f32 %v750_v4, %v750_v4 }
   0xe   :  { %v142_v14 = vsel %vm72_vm0, %v63_v10, 0.0  ;;  %v65_v18 = vmul.f32 %v761_v12, %v761_v12  ;;  %v64_v19 = vmul.f32 %v766_v13, %v766_v13  ;;  %v67_v26 = vmul.f32 %v777_v20, %v777_v20 }
   0xf   :  { %v139_v15 = vsel %vm72_vm0, %v62_v11, 0.0  ;;  %v66_v27 = vmul.f32 %v782_v21, %v782_v21  ;;  %v71_v44 = vmul.f32 %v809_v38, %v809_v38  ;;  %v70_v45 = vmul.f32 %v814_v39, %v814_v39 }
  0x10   :  { %v154_v32 = vsel %vm72_vm0, %v67_v26, 0.0 }
  0x11   :  { %95 = vadd.xlane.f32.xlu1 %v94_v24  ;;  %92 = vadd.xlane.f32.xlu0 %v91_v25  ;;  %v148_v24 = vsel %vm72_vm0, %v65_v18, 0.0  ;;  %v145_v25 = vsel %vm72_vm0, %v64_v19, 0.0  ;;  %v151_v33 = vsel %vm72_vm0, %v66_v27, 0.0 }
  0x15   :  { %101 = vadd.xlane.f32.xlu1 %v100_v30  ;;  %98 = vadd.xlane.f32.xlu0 %v97_v31  ;;  %v793_v30 = vld [vmem:[%s984_s0 + $0xe8] sm:$0xff]  ;;  %v798_v31 = vld [vmem:[%s984_s0 + $0xe0] sm:$0xff] }
  0x19   :  { %107 = vadd.xlane.f32.xlu1 %v106_v36  ;;  %104 = vadd.xlane.f32.xlu0 %v103_v37  ;;  %v69_v36 = vmul.f32 %v793_v30, %v793_v30  ;;  %v68_v37 = vmul.f32 %v798_v31, %v798_v31 }
  0x1d   :  { %113 = vadd.xlane.f32.xlu1 %v112_v42  ;;  %110 = vadd.xlane.f32.xlu0 %v109_v43  ;;  %v160_v42 = vsel %vm72_vm0, %v69_v36, 0.0  ;;  %v157_v43 = vsel %vm72_vm0, %v68_v37, 0.0 }
  0x21   :  { %119 = vadd.xlane.f32.xlu1 %v118_v48  ;;  %116 = vadd.xlane.f32.xlu0 %v115_v49  ;;  %v166_v48 = vsel %vm72_vm0, %v71_v44, 0.0  ;;  %v163_v49 = vsel %vm72_vm0, %v70_v45, 0.0 }
  0x25   :  { %125 = vadd.xlane.f32.xlu1 %v124_v54  ;;  %122 = vadd.xlane.f32.xlu0 %v121_v55 }
  0x29   :  { %131 = vadd.xlane.f32.xlu1 %v130_v60  ;;  %128 = vadd.xlane.f32.xlu0 %v127_v61 }
  0x2d   :  { %137 = vadd.xlane.f32.xlu1 %v136_v5  ;;  %134 = vadd.xlane.f32.xlu0 %v133_v7 }
  0x31   :  { %143 = vadd.xlane.f32.xlu1 %v142_v14  ;;  %140 = vadd.xlane.f32.xlu0 %v139_v15 }
  0x35   :  { %149 = vadd.xlane.f32.xlu1 %v148_v24  ;;  %146 = vadd.xlane.f32.xlu0 %v145_v25 }
  0x39   :  { %155 = vadd.xlane.f32.xlu1 %v154_v32  ;;  %152 = vadd.xlane.f32.xlu0 %v151_v33 }
  0x3d   :  { %161 = vadd.xlane.f32.xlu1 %v160_v42  ;;  %158 = vadd.xlane.f32.xlu0 %v157_v43 }
  0x41   :  { %167 = vadd.xlane.f32.xlu1 %v166_v48  ;;  %164 = vadd.xlane.f32.xlu0 %v163_v49 }
  0x92   :  { %v81_v50 = vpop.xlane.xlu1 %80  ;;  %v75_v51 = vpop.xlane.xlu0 %74 }
  0x93   :  { %v171_v54 = vmax.f32 %v81_v50, 1e-24  ;;  %v169_v55 = vmax.f32 %v75_v51, 1e-24 }
  0x95   :  { %494 = vrsqrt.f32 %v171_v54 }
  0x96   :  { %496 = vrsqrt.f32 %v169_v55  ;;  %v84_v56 = vpop.xlane.xlu1 %83  ;;  %v78_v57 = vpop.xlane.xlu0 %77 }
  0x97   :  { %v172_v60 = vmax.f32 %v84_v56, 1e-24  ;;  %v170_v61 = vmax.f32 %v78_v57, 1e-24 }
  0x99   :  { %498 = vrsqrt.f32 %v172_v60 }
  0x9a   :  { %500 = vrsqrt.f32 %v170_v61  ;;  %v90_v62 = vpop.xlane.xlu1 %89  ;;  %v87_v63 = vpop.xlane.xlu0 %86 }
  0x9b   :  { %v174_v5 = vmax.f32 %v90_v62, 1e-24  ;;  %v173_v7 = vmax.f32 %v87_v63, 1e-24 }
  0x9d   :  { %502 = vrsqrt.f32 %v174_v5 }
  0x9e   :  { %504 = vrsqrt.f32 %v173_v7  ;;  %v96_v10 = vpop.xlane.xlu1 %95  ;;  %v93_v11 = vpop.xlane.xlu0 %92 }
  0x9f   :  { %v495_v14 = vpop.eup %494  ;;  %v176_v15 = vmax.f32 %v96_v10, 1e-24  ;;  %v175_v18 = vmax.f32 %v93_v11, 1e-24 }
  0xa0   :  { %v497_v19 = vpop.eup %496  ;;  %v235_v24 = vmul.f32 %v495_v14, %v571_v0 }
  0xa1   :  { %v233_v25 = vmul.f32 %v497_v19, %v576_v1  ;;  %506 = vrsqrt.f32 %v176_v15 }
  0xa2   :  { %v464_v26 = vpack.c.bf16 %v235_v24, %v235_v24  ;;  %508 = vrsqrt.f32 %v175_v18  ;;  %v102_v27 = vpop.xlane.xlu1 %101  ;;  %v99_v32 = vpop.xlane.xlu0 %98 }
  0xa3   :  { %v499_v33 = vpop.eup %498  ;;  %v462_v36 = vpack.c.bf16 %v233_v25, %v233_v25  ;;  %v178_v37 = vmax.f32 %v102_v27, 1e-24  ;;  %v177_v42 = vmax.f32 %v99_v32, 1e-24 }
  0xa4   :  { %v501_v43 = vpop.eup %500  ;;  %396 = vst.msk [vmem:[%s985_s1 + $0x8] sm:$0xf] %vm393_vm1, %v464_v26  ;;  %v236_v0 = vmul.f32 %v499_v33, %v581_v2 }
  0xa5   :  { %394 = vst.msk [vmem:[%s985_s1] sm:$0xf] %vm393_vm1, %v462_v36  ;;  %v234_v1 = vmul.f32 %v501_v43, %v592_v6  ;;  %510 = vrsqrt.f32 %v178_v37 }
  0xa6   :  { %v465_v44 = vpack.c.bf16 %v236_v0, %v236_v0  ;;  %512 = vrsqrt.f32 %v177_v42  ;;  %v108_v45 = vpop.xlane.xlu1 %107  ;;  %v105_v48 = vpop.xlane.xlu0 %104 }
  0xa7   :  { %v503_v49 = vpop.eup %502  ;;  %v463_v50 = vpack.c.bf16 %v234_v1, %v234_v1  ;;  %v180_v51 = vmax.f32 %v108_v45, 1e-24  ;;  %v179_v54 = vmax.f32 %v105_v48, 1e-24 }
  0xa8   :  { %v505_v55 = vpop.eup %504  ;;  %397 = vst.msk [vmem:[%s985_s1 + $0xc] sm:$0xf] %vm393_vm1, %v465_v44  ;;  %v238_v2 = vmul.f32 %v503_v49, %v599_v8 }
  0xa9   :  { %395 = vst.msk [vmem:[%s985_s1 + $0x4] sm:$0xf] %vm393_vm1, %v463_v50  ;;  %v237_v6 = vmul.f32 %v505_v55, %v604_v9  ;;  %514 = vrsqrt.f32 %v180_v51 }
  0xaa   :  { %v467_v56 = vpack.c.bf16 %v238_v2, %v238_v2  ;;  %516 = vrsqrt.f32 %v179_v54  ;;  %v114_v57 = vpop.xlane.xlu1 %113  ;;  %v111_v60 = vpop.xlane.xlu0 %110 }
  0xab   :  { %v507_v61 = vpop.eup %506  ;;  %v466_v62 = vpack.c.bf16 %v237_v6, %v237_v6  ;;  %v182_v63 = vmax.f32 %v114_v57, 1e-24  ;;  %v181_v5 = vmax.f32 %v111_v60, 1e-24 }
  0xac   :  { %v509_v7 = vpop.eup %508  ;;  %399 = vst.msk [vmem:[%s985_s1 + $0x14] sm:$0xf] %vm393_vm1, %v467_v56  ;;  %v240_v8 = vmul.f32 %v507_v61, %v617_v16 }
  0xad   :  { %398 = vst.msk [vmem:[%s985_s1 + $0x10] sm:$0xf] %vm393_vm1, %v466_v62  ;;  %v239_v9 = vmul.f32 %v509_v7, %v622_v17  ;;  %518 = vrsqrt.f32 %v182_v63 }
  0xae   :  { %v469_v10 = vpack.c.bf16 %v240_v8, %v240_v8  ;;  %520 = vrsqrt.f32 %v181_v5  ;;  %v120_v11 = vpop.xlane.xlu1 %119  ;;  %v117_v14 = vpop.xlane.xlu0 %116 }
  0xaf   :  { %v511_v15 = vpop.eup %510  ;;  %v468_v18 = vpack.c.bf16 %v239_v9, %v239_v9  ;;  %v184_v19 = vmax.f32 %v120_v11, 1e-24  ;;  %v183_v24 = vmax.f32 %v117_v14, 1e-24 }
  0xb0   :  { %v513_v25 = vpop.eup %512  ;;  %401 = vst.msk [vmem:[%s985_s1 + $0x1c] sm:$0xf] %vm393_vm1, %v469_v10  ;;  %v242_v16 = vmul.f32 %v511_v15, %v633_v22 }
  0xb1   :  { %400 = vst.msk [vmem:[%s985_s1 + $0x18] sm:$0xf] %vm393_vm1, %v468_v18  ;;  %v241_v17 = vmul.f32 %v513_v25, %v638_v23  ;;  %522 = vrsqrt.f32 %v184_v19 }
  0xb2   :  { %v471_v26 = vpack.c.bf16 %v242_v16, %v242_v16  ;;  %524 = vrsqrt.f32 %v183_v24  ;;  %v126_v27 = vpop.xlane.xlu1 %125  ;;  %v123_v32 = vpop.xlane.xlu0 %122 }
  0xb3   :  { %v515_v33 = vpop.eup %514  ;;  %v470_v36 = vpack.c.bf16 %v241_v17, %v241_v17  ;;  %v186_v37 = vmax.f32 %v126_v27, 1e-24  ;;  %v185_v42 = vmax.f32 %v123_v32, 1e-24 }
  0xb4   :  { %v517_v43 = vpop.eup %516  ;;  %403 = vst.msk [vmem:[%s985_s1 + $0x24] sm:$0xf] %vm393_vm1, %v471_v26  ;;  %v244_v22 = vmul.f32 %v515_v33, %v649_v28 }
  0xb5   :  { %402 = vst.msk [vmem:[%s985_s1 + $0x20] sm:$0xf] %vm393_vm1, %v470_v36  ;;  %v243_v23 = vmul.f32 %v517_v43, %v654_v29  ;;  %526 = vrsqrt.f32 %v186_v37 }
  0xb6   :  { %v473_v0 = vpack.c.bf16 %v244_v22, %v244_v22  ;;  %528 = vrsqrt.f32 %v185_v42  ;;  %v132_v1 = vpop.xlane.xlu1 %131  ;;  %v129_v44 = vpop.xlane.xlu0 %128 }
  0xb7   :  { %v519_v45 = vpop.eup %518  ;;  %v472_v48 = vpack.c.bf16 %v243_v23, %v243_v23  ;;  %v188_v49 = vmax.f32 %v132_v1, 1e-24  ;;  %v187_v50 = vmax.f32 %v129_v44, 1e-24 }
  0xb8   :  { %v521_v51 = vpop.eup %520  ;;  %405 = vst.msk [vmem:[%s985_s1 + $0x2c] sm:$0xf] %vm393_vm1, %v473_v0  ;;  %v246_v28 = vmul.f32 %v519_v45, %v665_v34 }
  0xb9   :  { %404 = vst.msk [vmem:[%s985_s1 + $0x28] sm:$0xf] %vm393_vm1, %v472_v48  ;;  %v245_v29 = vmul.f32 %v521_v51, %v670_v35  ;;  %530 = vrsqrt.f32 %v188_v49 }
  0xba   :  { %v475_v54 = vpack.c.bf16 %v246_v28, %v246_v28  ;;  %532 = vrsqrt.f32 %v187_v50  ;;  %v138_v55 = vpop.xlane.xlu1 %137  ;;  %v135_v2 = vpop.xlane.xlu0 %134 }
  0xbb   :  { %v523_v6 = vpop.eup %522  ;;  %v474_v56 = vpack.c.bf16 %v245_v29, %v245_v29  ;;  %v190_v57 = vmax.f32 %v138_v55, 1e-24  ;;  %v189_v60 = vmax.f32 %v135_v2, 1e-24 }
  0xbc   :  { %v525_v61 = vpop.eup %524  ;;  %407 = vst.msk [vmem:[%s985_s1 + $0x34] sm:$0xf] %vm393_vm1, %v475_v54  ;;  %v248_v34 = vmul.f32 %v523_v6, %v681_v40 }
  0xbd   :  { %406 = vst.msk [vmem:[%s985_s1 + $0x30] sm:$0xf] %vm393_vm1, %v474_v56  ;;  %v247_v35 = vmul.f32 %v525_v61, %v686_v41  ;;  %534 = vrsqrt.f32 %v190_v57 }
  0xbe   :  { %v477_v62 = vpack.c.bf16 %v248_v34, %v248_v34  ;;  %536 = vrsqrt.f32 %v189_v60  ;;  %v144_v63 = vpop.xlane.xlu1 %143  ;;  %v141_v5 = vpop.xlane.xlu0 %140 }
  0xbf   :  { %v527_v7 = vpop.eup %526  ;;  %v476_v8 = vpack.c.bf16 %v247_v35, %v247_v35  ;;  %v192_v9 = vmax.f32 %v144_v63, 1e-24  ;;  %v191_v10 = vmax.f32 %v141_v5, 1e-24 }
  0xc0   :  { %v529_v11 = vpop.eup %528  ;;  %409 = vst.msk [vmem:[%s985_s1 + $0x3c] sm:$0xf] %vm393_vm1, %v477_v62  ;;  %v250_v40 = vmul.f32 %v527_v7, %v697_v46 }
  0xc1   :  { %408 = vst.msk [vmem:[%s985_s1 + $0x38] sm:$0xf] %vm393_vm1, %v476_v8  ;;  %v249_v41 = vmul.f32 %v529_v11, %v702_v47  ;;  %538 = vrsqrt.f32 %v192_v9 }
  0xc2   :  { %v479_v14 = vpack.c.bf16 %v250_v40, %v250_v40  ;;  %540 = vrsqrt.f32 %v191_v10  ;;  %v150_v15 = vpop.xlane.xlu1 %149  ;;  %v147_v18 = vpop.xlane.xlu0 %146 }
  0xc3   :  { %v531_v19 = vpop.eup %530  ;;  %v478_v24 = vpack.c.bf16 %v249_v41, %v249_v41  ;;  %v194_v25 = vmax.f32 %v150_v15, 1e-24  ;;  %v193_v16 = vmax.f32 %v147_v18, 1e-24 }
  0xc4   :  { %v533_v17 = vpop.eup %532  ;;  %411 = vst.msk [vmem:[%s985_s1 + $0x44] sm:$0xf] %vm393_vm1, %v479_v14  ;;  %v252_v46 = vmul.f32 %v531_v19, %v713_v52 }
  0xc5   :  { %410 = vst.msk [vmem:[%s985_s1 + $0x40] sm:$0xf] %vm393_vm1, %v478_v24  ;;  %v251_v47 = vmul.f32 %v533_v17, %v718_v53  ;;  %542 = vrsqrt.f32 %v194_v25 }
  0xc6   :  { %v481_v26 = vpack.c.bf16 %v252_v46, %v252_v46  ;;  %544 = vrsqrt.f32 %v193_v16  ;;  %v156_v27 = vpop.xlane.xlu1 %155  ;;  %v153_v32 = vpop.xlane.xlu0 %152 }
  0xc7   :  { %v535_v33 = vpop.eup %534  ;;  %v480_v36 = vpack.c.bf16 %v251_v47, %v251_v47  ;;  %v196_v37 = vmax.f32 %v156_v27, 1e-24  ;;  %v195_v42 = vmax.f32 %v153_v32, 1e-24 }
  0xc8   :  { %v537_v43 = vpop.eup %536  ;;  %413 = vst.msk [vmem:[%s985_s1 + $0x4c] sm:$0xf] %vm393_vm1, %v481_v26  ;;  %v254_v52 = vmul.f32 %v535_v33, %v729_v58 }
  0xc9   :  { %412 = vst.msk [vmem:[%s985_s1 + $0x48] sm:$0xf] %vm393_vm1, %v480_v36  ;;  %v253_v53 = vmul.f32 %v537_v43, %v734_v59  ;;  %546 = vrsqrt.f32 %v196_v37 }
  0xca   :  { %v483_v22 = vpack.c.bf16 %v254_v52, %v254_v52  ;;  %548 = vrsqrt.f32 %v195_v42  ;;  %v162_v23 = vpop.xlane.xlu1 %161  ;;  %v159_v0 = vpop.xlane.xlu0 %158 }
  0xcb   :  { %v539_v1 = vpop.eup %538  ;;  %v482_v44 = vpack.c.bf16 %v253_v53, %v253_v53  ;;  %v198_v45 = vmax.f32 %v162_v23, 1e-24  ;;  %v197_v48 = vmax.f32 %v159_v0, 1e-24 }
  0xcc   :  { %v541_v49 = vpop.eup %540  ;;  %415 = vst.msk [vmem:[%s985_s1 + $0x54] sm:$0xf] %vm393_vm1, %v483_v22  ;;  %v256_v58 = vmul.f32 %v539_v1, %v745_v3 }
  0xcd   :  { %414 = vst.msk [vmem:[%s985_s1 + $0x50] sm:$0xf] %vm393_vm1, %v482_v44  ;;  %v255_v59 = vmul.f32 %v541_v49, %v750_v4  ;;  %550 = vrsqrt.f32 %v198_v45 }
  0xce   :  { %v485_v50 = vpack.c.bf16 %v256_v58, %v256_v58  ;;  %552 = vrsqrt.f32 %v197_v48  ;;  %v168_v51 = vpop.xlane.xlu1 %167  ;;  %v165_v28 = vpop.xlane.xlu0 %164 }
  0xcf   :  { %v543_v29 = vpop.eup %542  ;;  %v484_v54 = vpack.c.bf16 %v255_v59, %v255_v59  ;;  %v200_v55 = vmax.f32 %v168_v51, 1e-24  ;;  %v199_v2 = vmax.f32 %v165_v28, 1e-24 }
  0xd0   :  { %v545_v6 = vpop.eup %544  ;;  %417 = vst.msk [vmem:[%s985_s1 + $0x5c] sm:$0xf] %vm393_vm1, %v485_v50  ;;  %v258_v3 = vmul.f32 %v543_v29, %v761_v12 }
  0xd1   :  { %416 = vst.msk [vmem:[%s985_s1 + $0x58] sm:$0xf] %vm393_vm1, %v484_v54  ;;  %v257_v4 = vmul.f32 %v545_v6, %v766_v13  ;;  %554 = vrsqrt.f32 %v200_v55 }
  0xd2   :  { %v487_v56 = vpack.c.bf16 %v258_v3, %v258_v3  ;;  %556 = vrsqrt.f32 %v199_v2 }
  0xd3   :  { %v547_v57 = vpop.eup %546  ;;  %v486_v60 = vpack.c.bf16 %v257_v4, %v257_v4 }
  0xd4   :  { %v549_v61 = vpop.eup %548  ;;  %419 = vst.msk [vmem:[%s985_s1 + $0x64] sm:$0xf] %vm393_vm1, %v487_v56  ;;  %v260_v12 = vmul.f32 %v547_v57, %v777_v20 }
  0xd5   :  { %418 = vst.msk [vmem:[%s985_s1 + $0x60] sm:$0xf] %vm393_vm1, %v486_v60  ;;  %v259_v13 = vmul.f32 %v549_v61, %v782_v21 }
  0xd6   :  { %v489_v34 = vpack.c.bf16 %v260_v12, %v260_v12 }
  0xd7   :  { %v551_v35 = vpop.eup %550  ;;  %v488_v62 = vpack.c.bf16 %v259_v13, %v259_v13 }
  0xd8   :  { %v553_v63 = vpop.eup %552  ;;  %421 = vst.msk [vmem:[%s985_s1 + $0x6c] sm:$0xf] %vm393_vm1, %v489_v34  ;;  %v262_v5 = vmul.f32 %v551_v35, %v793_v30 }
  0xd9   :  { %420 = vst.msk [vmem:[%s985_s1 + $0x68] sm:$0xf] %vm393_vm1, %v488_v62  ;;  %v261_v20 = vmul.f32 %v553_v63, %v798_v31 }
  0xda   :  { %v491_v7 = vpack.c.bf16 %v262_v5, %v262_v5 }
  0xdb   :  { %v555_v21 = vpop.eup %554  ;;  %v490_v8 = vpack.c.bf16 %v261_v20, %v261_v20 }
  0xdc   :  { %v557_v9 = vpop.eup %556  ;;  %423 = vst.msk [vmem:[%s985_s1 + $0x74] sm:$0xf] %vm393_vm1, %v491_v7  ;;  %v264_v10 = vmul.f32 %v555_v21, %v809_v38 }
  0xdd   :  { %422 = vst.msk [vmem:[%s985_s1 + $0x70] sm:$0xf] %vm393_vm1, %v490_v8  ;;  %v263_v30 = vmul.f32 %v557_v9, %v814_v39 }
  0xde   :  { %v493_v11 = vpack.c.bf16 %v264_v10, %v264_v10 }
  0xdf   :  { %v492_v31 = vpack.c.bf16 %v263_v30, %v263_v30 }
  0xe0   :  { %425 = vst.msk [vmem:[%s985_s1 + $0x7c] sm:$0xf] %vm393_vm1, %v493_v11 }
  0xe1   :  { %424 = vst.msk [vmem:[%s985_s1 + $0x78] sm:$0xf] %vm393_vm1, %v492_v31 }

</bundles_post_ra>
